<compile_context>
chip_gen: v7x
topology: tpu7x:2x2x1
jax: 0.10.0
libtpu: 0.0.40
codegen_flags: <defaults>
</compile_context>

<pallas_src>
import jax
import jax.numpy as jnp
from jax.experimental import pallas as pl
from jax.experimental.pallas import tpu as pltpu


def base_actor_kernel(x_ref, w1_ref, b1_ref, w2_ref, b2_ref, o_ref):
    # Both layers fused: h1 lives entirely in vregs/VMEM, never HBM.
    x = x_ref[...]  # f32
    h1 = jnp.tanh(
        jnp.dot(x, w1_ref[...], preferred_element_type=jnp.float32) + b1_ref[...]
    )
    h2 = jnp.tanh(
        jnp.dot(h1, w2_ref[...], preferred_element_type=jnp.float32) + b2_ref[...]
    )
    o_ref[...] = h2.astype(o_ref.dtype)


def _round_up(x, m):
    return ((x + m - 1) // m) * m


def _cost_estimate(B, S, H):
    # 2 matmuls + 2 tanh layers; f32 I/O.
    return pl.CostEstimate(
        flops=2 * B * (S * H + H * H),
        transcendentals=2 * B * H,
        bytes_accessed=4 * (B * S + B * H + S * H + H * H + 2 * H),
    )


def _forward_whole(state, w1, b1, w2, b2):
    """Small-batch path: single grid-less invocation, everything in VMEM."""
    B, S = state.shape
    H = w1.shape[1]
    vmem = pl.BlockSpec(memory_space=pltpu.MemorySpace.VMEM)
    return pl.pallas_call(
        base_actor_kernel,
        out_shape=jax.ShapeDtypeStruct((B, H), jnp.float32),
        in_specs=[vmem, vmem, vmem, vmem, vmem],
        out_specs=vmem,
        cost_estimate=_cost_estimate(B, S, H),
    )(state, w1, b1, w2, b2)


def _pick_tile(B, tb_max, *, min_steps=2, align=8):
    """Largest sublane-aligned batch tile that still leaves >= min_steps grid
    steps (so v7x's two TensorCores both get work on the 'parallel' axis)."""
    tb = min(tb_max, _round_up(B, align))
    tb = min(tb, _round_up(pl.cdiv(B, min_steps), align))
    return max(align, tb)


def _forward_tiled(state, w1, b1, w2, b2, *, tb_max=2048):
    """Rollout-scale path: tile over batch; weights/biases stay VMEM-resident
    across the whole grid (index_map -> (0, 0)); batch axis marked 'parallel'
    so v7x's two TensorCores split the grid (harmless on v5e/v6e)."""
    B, S = state.shape
    H = w1.shape[1]
    tb = _pick_tile(B, tb_max)
    nb = pl.cdiv(B, tb)
    Bp = nb * tb
    if Bp != B:
        state = jnp.pad(state, ((0, Bp - B), (0, 0)))

    out = pl.pallas_call(
        base_actor_kernel,
        out_shape=jax.ShapeDtypeStruct((Bp, H), jnp.float32),
        grid_spec=pl.GridSpec(
            grid=(nb,),
            in_specs=[
                pl.BlockSpec((tb, S), lambda i: (i, 0)),
                pl.BlockSpec((S, H), lambda i: (0, 0)),
                pl.BlockSpec((1, H), lambda i: (0, 0)),
                pl.BlockSpec((H, H), lambda i: (0, 0)),
                pl.BlockSpec((1, H), lambda i: (0, 0)),
            ],
            out_specs=pl.BlockSpec((tb, H), lambda i: (i, 0)),
        ),
        compiler_params=pltpu.CompilerParams(
            dimension_semantics=("parallel",),
        ),
        cost_estimate=_cost_estimate(B, S, H),
    )(state, w1, b1, w2, b2)
    return out[:B] if Bp != B else out


def base_actor_forward(state, w1, b1, w2, b2, *, tb_max=2048, small_batch_max=512):
    """state: (B, S) f32; weights stored transposed (in, out); biases (1, out)."""
    # TODO(synk): if this is called once per env step at tiny B inside a rollout
    # loop, hoist weight residency across calls (cross-pallas_call VMEM futures)
    # or batch env steps — at B~8 the call is pure fixed cost.
    if state.shape[0] <= small_batch_max:
        return _forward_whole(state, w1, b1, w2, b2)
    return _forward_tiled(state, w1, b1, w2, b2, tb_max=tb_max)


def init_params(key, state_size, hidden_size):
    """Deterministic init mimicking PyTorch nn.Linear (uniform +-1/sqrt(fan_in)).
    Weights stored as (in, out) = W.T relative to PyTorch's (out, in)."""
    k1, k2, k3, k4 = jax.random.split(key, 4)
    bound1 = 1.0 / jnp.sqrt(state_size)
    bound2 = 1.0 / jnp.sqrt(hidden_size)
    w1 = jax.random.uniform(k1, (state_size, hidden_size), jnp.float32,
                            minval=-bound1, maxval=bound1)
    b1 = jax.random.uniform(k2, (1, hidden_size), jnp.float32,
                            minval=-bound1, maxval=bound1)
    w2 = jax.random.uniform(k3, (hidden_size, hidden_size), jnp.float32,
                            minval=-bound2, maxval=bound2)
    b2 = jax.random.uniform(k4, (1, hidden_size), jnp.float32,
                            minval=-bound2, maxval=bound2)
    return w1, b1, w2, b2


if __name__ == "__main__":
    key = jax.random.PRNGKey(0)
    k_state, k_params, k_big = jax.random.split(key, 3)

    batch = 8
    state_size = 4      # observation_space.shape[0]
    hidden_size = 32

    w1, b1, w2, b2 = init_params(k_params, state_size, hidden_size)

    def ref_fwd(x):
        return jnp.tanh(jnp.tanh(x @ w1 + b1) @ w2 + b2)

    # Small-batch (grid-less, whole-array VMEM) path.
    state = jax.random.normal(k_state, (batch, state_size), dtype=jnp.float32)
    out = jax.block_until_ready(base_actor_forward(state, w1, b1, w2, b2))
    assert out.shape == (batch, hidden_size)
    assert jnp.allclose(out, ref_fwd(state), atol=1e-5, rtol=1e-5)

    # Batch-tiled path (weights VMEM-resident, parallel batch axis, >=2 grid
    # steps); B=1030 also exercises the non-multiple-of-tile batch padding.
    big_batch = 1030
    big_state = jax.random.normal(k_big, (big_batch, state_size), dtype=jnp.float32)
    out_big = jax.block_until_ready(
        base_actor_forward(big_state, w1, b1, w2, b2, tb_max=2048))
    assert out_big.shape == (big_batch, hidden_size)
    assert jnp.allclose(out_big, ref_fwd(big_state), atol=1e-5, rtol=1e-5)

    print("KERNEL_OK")
</pallas_src>

<mosaic_0001>
module attributes {stable_mosaic.version = 11 : i64} {
  func.func @base_actor_kernel(%arg0: memref<8x4xf32, #tpu.memory_space<vmem>>, %arg1: memref<4x32xf32, #tpu.memory_space<vmem>>, %arg2: memref<1x32xf32, #tpu.memory_space<vmem>>, %arg3: memref<32x32xf32, #tpu.memory_space<vmem>>, %arg4: memref<1x32xf32, #tpu.memory_space<vmem>>, %arg5: memref<8x32xf32, #tpu.memory_space<vmem>>) attributes {dimension_semantics = [], scalar_prefetch = 0 : i64, scratch_operands = 0 : i64, tpu.core_type = #tpu.core_type<tc>} {
    %c0 = arith.constant 0 : index
    %c0_0 = arith.constant 0 : index
    %0 = vector.load %arg0[%c0, %c0_0] : memref<8x4xf32, #tpu.memory_space<vmem>>, vector<8x4xf32>
    %c0_1 = arith.constant 0 : index
    %c0_2 = arith.constant 0 : index
    %1 = vector.load %arg1[%c0_1, %c0_2] : memref<4x32xf32, #tpu.memory_space<vmem>>, vector<4x32xf32>
    %cst = arith.constant dense<0.000000e+00> : vector<8x32xf32>
    %2 = tpu.matmul %0, %1, %cst {dimension_numbers = #tpu.dot_dimension_numbers<[1], [0], [0], [1], [0, 0, 1, 1], [], []>} : vector<8x4xf32>, vector<4x32xf32>, vector<8x32xf32> -> vector<8x32xf32>
    %c0_3 = arith.constant 0 : index
    %c0_4 = arith.constant 0 : index
    %3 = vector.load %arg2[%c0_3, %c0_4] : memref<1x32xf32, #tpu.memory_space<vmem>>, vector<1x32xf32>
    %4 = vector.broadcast %3 : vector<1x32xf32> to vector<8x32xf32>
    %5 = arith.addf %2, %4 : vector<8x32xf32>
    %6 = math.tanh %5 : vector<8x32xf32>
    %c0_5 = arith.constant 0 : index
    %c0_6 = arith.constant 0 : index
    %7 = vector.load %arg3[%c0_5, %c0_6] : memref<32x32xf32, #tpu.memory_space<vmem>>, vector<32x32xf32>
    %cst_7 = arith.constant dense<0.000000e+00> : vector<8x32xf32>
    %8 = tpu.matmul %6, %7, %cst_7 {dimension_numbers = #tpu.dot_dimension_numbers<[1], [0], [0], [1], [0, 0, 1, 1], [], []>} : vector<8x32xf32>, vector<32x32xf32>, vector<8x32xf32> -> vector<8x32xf32>
    %c0_8 = arith.constant 0 : index
    %c0_9 = arith.constant 0 : index
    %9 = vector.load %arg4[%c0_8, %c0_9] : memref<1x32xf32, #tpu.memory_space<vmem>>, vector<1x32xf32>
    %10 = vector.broadcast %9 : vector<1x32xf32> to vector<8x32xf32>
    %11 = arith.addf %8, %10 : vector<8x32xf32>
    %12 = math.tanh %11 : vector<8x32xf32>
    %c0_10 = arith.constant 0 : index
    %c0_11 = arith.constant 0 : index
    %13 = vector.load %arg5[%c0_10, %c0_11] : memref<8x32xf32, #tpu.memory_space<vmem>>, vector<8x32xf32>
    tpu.vector_store %arg5[%c0_10, %c0_11], %12 {strides = array<i32>} : memref<8x32xf32, #tpu.memory_space<vmem>>, vector<8x32xf32>,
    return
  }
}

</mosaic_0001>

<bundles_post_ra>
// kernel: tpu_custom_call.1
= control target key start
LH: loop header
LB: loop body
LE: loop exit
PB: predicated region body
PF: predicated region fallthrough
CT: control target
= control target key end

     0   :  { %10 = vsyncpa [#allocation3], 0  ;;  %s391_s0 = inlined_call_operand.vmem [shape: f32[8,4], index: 0, kind: input, shape index: {}]   ;;  %s392_s1 = inlined_call_operand.vmem [shape: f32[4,32], index: 1, kind: input, shape index: {}]   ;;  %s393_s2 = inlined_call_operand.vmem [shape: f32[1,32], index: 2, kind: input, shape index: {}]   ;;  %s394_s3 = inlined_call_operand.hbm [shape: f32[32,32], index: 3, kind: input, shape index: {}]   ;;  %s395_s4 = inlined_call_operand.vmem [shape: f32[1,32], index: 4, kind: input, shape index: {}]   ;;  %s396_s5 = inlined_call_operand.hbm [shape: f32[8,32], index: 5, kind: output, shape index: {}]  }
   0x1   :  { %11 = vsyncpa [#allocation4], 0  ;;  %s318_s18 = smov [#allocation2]   ;;  %s270_s22 = scalar_lea.hbm %s394_s3, 512 }
   0x2   :  { %s23_s19 = sshll.u32 %s318_s18, 4  ;;  %p271_p0 = scmp.ne.s32.totalorder %s394_s3, %s270_s22  ;;  %s24_s19 = int_to_ptr.vmem [resolvable:$true] %s23_s19 }
   0x3   :  { %p274_p1 = scmp.lt.u32.totalorder %s270_s22, %s394_s3 }
   0x5   :  { %p276_p2 = pnand %p274_p1, %p271_p0 }
   0x7   :  { %279 = shalt.err (!%p276_p2)
}
   0x8   :  { %s280_s27 = scalar_lea.vmem %s24_s19, 512  ;;  %p285_p4 = scmp.lt.s32.totalorder %s24_s19, %s24_s19 }
   0x9   :  { %p281_p3 = scmp.ne.s32.totalorder %s24_s19, %s280_s27  ;;  %p286_p5 = scmp.lt.s32.totalorder %s280_s27, %s280_s27 }
   0xb   :  { %p287_p6 = por %p286_p5, %p285_p4 }
   0xd   :  { %p288_p7 = pnand %p287_p6, %p281_p3 }
   0xf   :  { %291 = shalt.err (!%p288_p7)
}
  0x10   :  { %s319_s28 = smov 128   ;;  %s320_s29 = smov 8  }
  0x11   :  { %29 = dma.hbm_to_vmem [thread:$0]  %s394_s3, 512, %s24_s19, [#allocation3], %s319_s28, %s319_s28, %s320_s29  }
  0x12   :  { %314 = dma.done.wait [#allocation3], 512  }
  0x13   :  { %315 = vsyncadd [#allocation3], 4294966784  ;;  %v321_v0 = vmov 0.0   ;;  %vm322_vm0 = vmmov 0   ;;  %vm48_vm1 = vcmask 1043456   ;;  %vm44_vm2 = vcmask 31744  }
  0x14   :  { %237 = vmatprep.subr.mxu0 %v321_v0  ;;  %239 = vmatprep.mubr.msk.f32.mxu0 %vm322_vm0, %v321_v0  ;;  %v36_v1 = vld [vmem:[%s392_s1] sm:$0xf]  ;;  %v124_v4 = vld [vmem:[#allocation2 + $0x8] sm:$0xff]  ;;  %v125_v5 = vld [vmem:[#allocation2 + $0x10] sm:$0xff]  ;;  %v323_v6 = vmov 0.0|0.0   ;;  %vm134_vm3 = vcmask 261120  }
  0x15   :  { %250 = vmatprep.mubr.msk.f32.mxu1 %vm322_vm0, %v321_v0  ;;  %v35_v2 = vld [vmem:[%s391_s0] sm:$0xff]  ;;  %238 = vmatpush3.msk.msra.mxu0 %vm48_vm1, %v36_v1  ;;  %v126_v8 = vld [vmem:[#allocation2 + $0x18] sm:$0xff]  ;;  %s324_s12 = smov [#allocation5]  }
  0x16   :  { %240 = vmatmul.mubr.msk.f32.vlgmr.msra.gmra.mrb[0].mxu0 %vm44_vm2, %v35_v2  ;;  %v123_v3 = vld [vmem:[#allocation2] sm:$0xff]  ;;  %253 = vmatprep.subr.bf16.mxu1 %v323_v6  ;;  %v257_v9 = vpack.c.bf16 %v126_v8, %v125_v5  ;;  %s216_s13 = sshll.u32 %s324_s12, 4  ;;  %s217_s13 = int_to_ptr.vmem [resolvable:$true] %s216_s13 }
  0x17   :  { %v254_v7 = vpack.c.bf16 %v124_v4, %v123_v3  ;;  %v225_v10 = vld [vmem:[%s393_s2] ss:$0 sm:$0xff]  ;;  %s292_s2 = scalar_lea.vmem %s217_s13, 128  ;;  %p297_p9 = scmp.lt.s32.totalorder %s217_s13, %s217_s13 }
  0x18   :  { %v228_v15 = vld [vmem:[%s395_s4] ss:$0 sm:$0xff]  ;;  %p293_p8 = scmp.ne.s32.totalorder %s217_s13, %s292_s2  ;;  %p298_p10 = scmp.lt.s32.totalorder %s292_s2, %s292_s2 }
  0x19   :  { %255 = vmatpush3.bf16.msra.mxu1 %v254_v7 }
  0x1a   :  { %256 = vmatprep.subr.bf16.mxu1 %v323_v6  ;;  %p299_p11 = por %p298_p10, %p297_p9 }
  0x1c   :  { %p300_p12 = pnand %p299_p11, %p293_p8 }
  0x1d   :  { %258 = vmatpush3.bf16.msra.mxu1 %v257_v9 }
  0xe9   :  { %v118_v11 = vpop.f32.mrb[0].mxu0 }
  0xea   :  { %v119_v12 = vadd.f32 %v225_v10, %v118_v11  ;;  %v241_v13 = vpop.f32.mrb[1].mxu0 }
  0xec   :  { %266 = vtanh.f32 %v119_v12 }
  0xf6   :  { %v267_v14 = vpop.eup %266 }
  0xf7   :  { %251 = vmatmul.mubr.msk.f32.vlgmr.msra.gmra.mrb[0].mxu1 %vm134_vm3, %v267_v14 }
 0x1ca   :  { %v204_v16 = vpop.f32.mrb[0].mxu1 }
 0x1cb   :  { %v205_v17 = vadd.f32 %v228_v15, %v204_v16  ;;  %v252_v18 = vpop.f32.mrb[1].mxu1 }
 0x1cd   :  { %268 = vtanh.f32 %v205_v17 }
 0x1d7   :  { %v269_v19 = vpop.eup %268 }
 0x1d8   :  { %209 = vst.msk [vmem:[#allocation5] sm:$0xff] %vm134_vm3, %v269_v19 }
 0x1d9   :  { %303 = shalt.err (!%p300_p12)
}
 0x1da   :  { %s304_s4 = scalar_lea.hbm %s396_s5, 128 }
 0x1db   :  { %p305_p13 = scmp.ne.s32.totalorder %s396_s5, %s304_s4  ;;  %p308_p0 = scmp.lt.u32.totalorder %s304_s4, %s396_s5 }
 0x1dd   :  { %p310_p1 = pnand %p308_p0, %p305_p13 }
 0x1df   :  { %313 = shalt.err (!%p310_p1)
}
 0x1e0   :  { %219 = dma.vmem_to_hbm [thread:$0]  %s217_s13, 128, %s396_s5, [#allocation4]  }
 0x1e1   :  { %316 = dma.done.wait [#allocation4], 128  }
 0x1e2   :  { %317 = vsyncadd [#allocation4], 4294967168 }
 0x1e3   :  { %223 = vsyncpa [#allocation3], 1 }
 0x1e4   :  { %224 = vsyncpa [#allocation4], 1 }

</bundles_post_ra>
